<compile_context>
chip_gen: v6e
topology: v6e:2x2x1
jax: 0.10.0
libtpu: 0.0.40
codegen_flags: <defaults>
</compile_context>

<pallas_src>
import functools

import jax
import jax.numpy as jnp
from jax.experimental import pallas as pl
from jax.experimental.pallas import tpu as pltpu

_CP = 128      # padded per-branch channel width (lane-dense)
_COUT = 100    # true per-branch channel count of the torch module


def _inception_kernel(x_ref, w1_ref, b1_ref, w3_ref, b3_ref, o_ref, *, L):
    # x_ref : (m, Cin)        bf16  collapsed (batch*length) rows for this tile
    # w1_ref: (Cin, 384)      bf16  three folded 1x1 weights, concatenated on Cout
    # b1_ref: (1, 384)        f32   folded 1x1 biases
    # w3_ref: (4, 128, 384)   bf16  per-3x3-layer [left | center | right] tap weights
    # b3_ref: (4, 1, 128)     f32   folded 3x3 biases
    # o_ref : (m, 384)        f32   [branch1 | branch2 | branch3] lane slabs
    m = o_ref.shape[0]
    cp = _CP
    f32 = jnp.float32
    bf16 = jnp.bfloat16

    # Per-row position within its length-L sequence (tiles start on sequence
    # boundaries). Kept (m, 1): lane-broadcast in the multiplies below is cheap.
    pos = jax.lax.broadcasted_iota(jnp.int32, (m, 1), 0) % L
    keep_l = (pos != 0).astype(f32)          # a row at l-1 exists in-sequence
    keep_r = (pos != (L - 1)).astype(f32)    # a row at l+1 exists in-sequence

    # ---- all three 1x1 convs + folded BN + ReLU: one lane-dense matmul ----
    h = jnp.dot(x_ref[...], w1_ref[...], preferred_element_type=f32)  # (m, 384)
    h = jnp.maximum(h + b1_ref[...], 0.0)                             # f32 epilogue
    o_ref[:, 0:cp] = h[:, 0:cp]                                       # branch 1

    def conv3(a, idx):
        # a: (m, 128) bf16. One (m,128)@(128,384) matmul for all three taps, then
        # shift the left/right result slabs on the XLU with pltpu.roll; the
        # circularly-wrapped rows land exactly on pos==0 / pos==L-1 rows, which
        # the masks zero (tiles are whole sequences), so the wrap is harmless.
        z = jnp.dot(a, w3_ref[idx], preferred_element_type=f32)       # (m, 384)
        zl = pltpu.roll(z[:, 0:cp], shift=1, axis=0)                  # row r <- tap@x[r-1]
        zc = z[:, cp:2 * cp]
        zr = pltpu.roll(z[:, 2 * cp:3 * cp], shift=m - 1, axis=0)     # row r <- tap@x[r+1]
        out = zc + zl * keep_l + zr * keep_r + b3_ref[idx]            # f32 epilogue
        return jnp.maximum(out, 0.0)

    # ---- branch 2: 1x1 -> 3x3 ----
    o_ref[:, cp:2 * cp] = conv3(h[:, cp:2 * cp].astype(bf16), 0)

    # ---- branch 3: 1x1 -> 3x3 -> 3x3 -> 3x3 ----
    a = conv3(h[:, 2 * cp:3 * cp].astype(bf16), 1)
    a = conv3(a.astype(bf16), 2)
    o_ref[:, 2 * cp:3 * cp] = conv3(a.astype(bf16), 3)


def _pack_params(params):
    """Fold BN scale into conv weights, pad channels to _CP, fuse 1x1s, pack 3x3 taps."""
    w1_cols, b1_cols = [], []
    for p in params["conv_1x1s"]:
        w = p["w"][0] * p["scale"][None, :]                            # (Cin, 100)
        w1_cols.append(jnp.pad(w, ((0, 0), (0, _CP - _COUT))))
        b1_cols.append(jnp.pad(p["bias"], (0, _CP - _COUT)))
    w1 = jnp.concatenate(w1_cols, axis=1).astype(jnp.bfloat16)          # (Cin, 384)
    b1 = jnp.concatenate(b1_cols)[None, :].astype(jnp.float32)          # (1, 384)

    w3_list, b3_list = [], []
    for p in params["conv_3x3s"]:
        w = p["w"] * p["scale"][None, None, :]                          # (3, 100, 100) tap-major
        w = jnp.pad(w, ((0, 0), (0, _CP - _COUT), (0, _CP - _COUT)))    # (3, 128, 128)
        # Pack taps on the output axis: lanes [0:128]=left (applied to x[l-1]),
        # [128:256]=center, [256:384]=right (applied to x[l+1]).
        w3_list.append(jnp.concatenate([w[0], w[1], w[2]], axis=1))     # (128, 384)
        b3_list.append(jnp.pad(p["bias"], (0, _CP - _COUT))[None, :])
    w3 = jnp.stack(w3_list).astype(jnp.bfloat16)                        # (4, 128, 384)
    b3 = jnp.stack(b3_list).astype(jnp.float32)                         # (4, 1, 128)
    return w1, b1, w3, b3


def _const_spec(shape, index_map):
    """Grid-invariant input: single pipeline buffer (second buffer is dead weight)."""
    try:
        return pl.BlockSpec(shape, index_map, pipeline_mode=pl.Buffered(1))
    except (TypeError, AttributeError, ValueError):
        return pl.BlockSpec(shape, index_map)


def basic_inception_module(params, x_ncl, *, m_target=2048, channels_last_padded=False):
    """x_ncl: (N, C_in, L) -> (N, 300, L), matching the PyTorch module.

    channels_last_padded=True returns the raw (N, L, 384) kernel layout (three
    128-wide branch slabs, valid channels 0:100 of each) and skips the trim+
    transpose HBM pass entirely.
    """
    N, Cin, L = x_ncl.shape
    x = jnp.transpose(x_ncl, (0, 2, 1)).astype(jnp.bfloat16)            # (N, L, Cin)

    w1, b1, w3, b3 = _pack_params(params)

    # Lane-dense K for the 1x1 matmul when Cin is large enough to matter; with a
    # tiny Cin the 1x1 is K-starved anyway and padding only inflates HBM traffic.
    cin_p = Cin
    if Cin >= 128 and Cin % 128:
        cin_p = -(-Cin // 128) * 128
        x = jnp.pad(x, ((0, 0), (0, 0), (0, cin_p - Cin)))
        w1 = jnp.pad(w1, ((0, cin_p - Cin), (0, 0)))

    # Rows-per-tile: a multiple of L (tiles align with sequence starts), roughly
    # m_target rows, and a multiple of 8 for clean sublane tiling.
    rows = max(1, min(N, -(-m_target // L)))
    while (rows * L) % 8:
        rows += 1
    # Prefer >= 2 grid steps so both v7x TensorCores get work when N allows it.
    if -(-N // rows) < 2 and N > 1:
        for cand in range(rows - 1, 0, -1):
            if (cand * L) % 8 == 0 and -(-N // cand) >= 2:
                rows = cand
                break
    n_pad = -(-N // rows) * rows
    if n_pad != N:
        x = jnp.pad(x, ((0, n_pad - N), (0, 0), (0, 0)))
    m_tile = rows * L
    M = n_pad * L
    x2 = x.reshape(M, cin_p)

    out = pl.pallas_call(
        functools.partial(_inception_kernel, L=L),
        out_shape=jax.ShapeDtypeStruct((M, 3 * _CP), jnp.float32),
        grid=(M // m_tile,),
        in_specs=[
            pl.BlockSpec((m_tile, cin_p), lambda i: (i, 0)),
            _const_spec(w1.shape, lambda i: (0, 0)),
            _const_spec(b1.shape, lambda i: (0, 0)),
            _const_spec(w3.shape, lambda i: (0, 0, 0)),
            _const_spec(b3.shape, lambda i: (0, 0, 0)),
        ],
        out_specs=pl.BlockSpec((m_tile, 3 * _CP), lambda i: (i, 0)),
        compiler_params=pltpu.CompilerParams(
            dimension_semantics=("parallel",),
            vmem_limit_bytes=32 * 1024 * 1024),
    )(x2, w1, b1, w3, b3)

    if channels_last_padded:
        return out.reshape(n_pad, L, 3 * _CP)[:N]                       # (N, L, 384)

    # Fused trim + transpose: one pass over the output.
    out = out.reshape(n_pad, L, 3, _CP)[:N, :, :, :_COUT]               # (N, L, 3, 100)
    return jnp.transpose(out, (0, 2, 3, 1)).reshape(N, 3 * _COUT, L)    # (N, 300, L)


def _fold_bn(gamma, beta, running_mean, running_var, eps=0.001):
    scale = gamma / jnp.sqrt(running_var + eps)
    bias = beta - running_mean * scale
    return scale, bias


def init_params(key, in_channels):
    """Deterministic parameters matching basic_inception_module.__init__."""
    params = {"conv_1x1s": [], "conv_3x3s": []}

    def make_block(key, cin, cout, k):
        k0, k1, k2, k3, k4 = jax.random.split(key, 5)
        # PyTorch Conv1d weight shape is (Cout, Cin, K); store tap-major (K, Cin, Cout)
        w = jax.random.normal(k0, (cout, cin, k), jnp.float32) * 0.1
        w_kic = jnp.transpose(w, (2, 1, 0))
        gamma = 1.0 + 0.1 * jax.random.normal(k1, (cout,), jnp.float32)
        beta = 0.1 * jax.random.normal(k2, (cout,), jnp.float32)
        r_mean = 0.1 * jax.random.normal(k3, (cout,), jnp.float32)
        r_var = jax.random.uniform(k4, (cout,), jnp.float32, 0.5, 1.5)
        scale, bias = _fold_bn(gamma, beta, r_mean, r_var)
        return {"w": w_kic, "scale": scale, "bias": bias}

    keys = jax.random.split(key, 7)
    for i in range(3):
        params["conv_1x1s"].append(make_block(keys[i], in_channels, 100, 1))
    for i in range(4):
        params["conv_3x3s"].append(make_block(keys[3 + i], 100, 100, 3))
    return params


def _reference(params, x_ncl):
    """Pure-JAX f32 reference (lax.conv) for a correctness check."""
    x = x_ncl.astype(jnp.float32)

    def block(p, y):
        # p["w"] is (K, Cin, Cout) -> conv wants (Cout, Cin, K) with NCL input
        w_oik = jnp.transpose(p["w"], (2, 1, 0))
        pad = (w_oik.shape[-1] - 1) // 2
        out = jax.lax.conv_general_dilated(
            y, w_oik, window_strides=(1,), padding=[(pad, pad)],
            dimension_numbers=("NCH", "OIH", "NCH"))
        out = out * p["scale"][None, :, None] + p["bias"][None, :, None]
        return jnp.maximum(out, 0.0)

    b1 = block(params["conv_1x1s"][0], x)
    b2 = block(params["conv_3x3s"][0], block(params["conv_1x1s"][1], x))
    b3 = block(params["conv_1x1s"][2], x)
    for i in range(1, 4):
        b3 = block(params["conv_3x3s"][i], b3)
    return jnp.concatenate([b1, b2, b3], axis=1)


if __name__ == "__main__":
    key = jax.random.PRNGKey(0)
    k_params, k_x = jax.random.split(key)

    N, C_IN, L = 2, 4, 16
    x = jax.random.normal(k_x, (N, C_IN, L), jnp.float32)
    params = init_params(k_params, C_IN)

    out = jax.block_until_ready(basic_inception_module(params, x))
    assert out.shape == (N, 300, L), out.shape

    ref = jax.block_until_ready(_reference(params, x))
    # bf16 matmul operands (f32 accumulation) vs f32 reference -> relaxed tolerance.
    max_err = float(jnp.max(jnp.abs(out - ref)))
    assert jnp.allclose(out, ref, atol=5e-2, rtol=5e-2), max_err

    print("KERNEL_OK")
</pallas_src>

<mosaic_0001>
module attributes {stable_mosaic.version = 11 : i64} {
  func.func @_inception_kernel(%arg0: i32, %arg1: memref<16x4xbf16, #tpu.memory_space<vmem>>, %arg2: memref<4x384xbf16, #tpu.memory_space<vmem>>, %arg3: memref<1x384xf32, #tpu.memory_space<vmem>>, %arg4: memref<4x128x384xbf16, #tpu.memory_space<vmem>>, %arg5: memref<4x1x128xf32, #tpu.memory_space<vmem>>, %arg6: memref<16x384xf32, #tpu.memory_space<vmem>>) attributes {dimension_semantics = [#tpu.dimension_semantics<parallel>], iteration_bounds = array<i64: 2>, scalar_prefetch = 0 : i64, scratch_operands = 0 : i64, tpu.core_type = #tpu.core_type<tc>, window_params = [{transform_indices = @transform_0, window_bounds = array<i64: 16, 4>}, {pipeline_mode = #tpu.pipeline_mode<synchronous>, transform_indices = @transform_1, window_bounds = array<i64: 4, 384>}, {pipeline_mode = #tpu.pipeline_mode<synchronous>, transform_indices = @transform_2, window_bounds = array<i64: 1, 384>}, {pipeline_mode = #tpu.pipeline_mode<synchronous>, transform_indices = @transform_3, window_bounds = array<i64: 4, 128, 384>}, {pipeline_mode = #tpu.pipeline_mode<synchronous>, transform_indices = @transform_4, window_bounds = array<i64: 4, 1, 128>}, {transform_indices = @transform_5, window_bounds = array<i64: 16, 384>}]} {
    %0 = tpu.iota {dimensions = array<i32: 0>} : vector<16x1xi32>
    %c16_i32 = arith.constant 16 : i32
    %c0_i32 = arith.constant 0 : i32
    %1 = arith.cmpi eq, %c16_i32, %c0_i32 : i32
    %c1_i32 = arith.constant 1 : i32
    %2 = arith.select %1, %c1_i32, %c16_i32 : i32
    %3 = vector.broadcast %2 : i32 to vector<16x1xi32>
    %4 = arith.remsi %0, %3 : vector<16x1xi32>
    %c0_i32_0 = arith.constant 0 : i32
    %5 = vector.broadcast %c0_i32_0 : i32 to vector<16x1xi32>
    %6 = arith.cmpi ne, %4, %5 : vector<16x1xi32>
    %c0_i32_1 = arith.constant 0 : i32
    %7 = vector.broadcast %c0_i32_1 : i32 to vector<16x1xi32>
    %8 = arith.cmpi slt, %4, %7 : vector<16x1xi32>
    %c0_i32_2 = arith.constant 0 : i32
    %9 = arith.cmpi slt, %2, %c0_i32_2 : i32
    %10 = vector.broadcast %9 : i1 to vector<16x1xi1>
    %11 = vector.broadcast %10 : vector<16x1xi1> to vector<16x1xi1>
    %12 = arith.xori %8, %11 : vector<16x1xi1>
    %13 = arith.andi %12, %6 : vector<16x1xi1>
    %14 = vector.broadcast %2 : i32 to vector<16x1xi32>
    %15 = arith.addi %4, %14 : vector<16x1xi32>
    %16 = arith.select %13, %15, %4 : vector<16x1xi1>, vector<16x1xi32>
    %c0_i32_3 = arith.constant 0 : i32
    %17 = vector.broadcast %c0_i32_3 : i32 to vector<16x1xi32>
    %18 = arith.cmpi ne, %16, %17 : vector<16x1xi32>
    %19 = arith.extui %18 : vector<16x1xi1> to vector<16x1xi32>
    %20 = arith.sitofp %19 : vector<16x1xi32> to vector<16x1xf32>
    %c15_i32 = arith.constant 15 : i32
    %21 = vector.broadcast %c15_i32 : i32 to vector<16x1xi32>
    %22 = arith.cmpi ne, %16, %21 : vector<16x1xi32>
    %23 = arith.extui %22 : vector<16x1xi1> to vector<16x1xi32>
    %24 = arith.sitofp %23 : vector<16x1xi32> to vector<16x1xf32>
    %c0 = arith.constant 0 : index
    %c0_4 = arith.constant 0 : index
    %25 = vector.load %arg1[%c0, %c0_4] : memref<16x4xbf16, #tpu.memory_space<vmem>>, vector<16x4xbf16>
    %c0_5 = arith.constant 0 : index
    %c0_6 = arith.constant 0 : index
    %26 = vector.load %arg2[%c0_5, %c0_6] : memref<4x384xbf16, #tpu.memory_space<vmem>>, vector<4x384xbf16>
    %cst = arith.constant dense<0.000000e+00> : vector<16x384xf32>
    %27 = tpu.matmul %25, %26, %cst {dimension_numbers = #tpu.dot_dimension_numbers<[1], [0], [0], [1], [0, 0, 1, 1], [], []>} : vector<16x4xbf16>, vector<4x384xbf16>, vector<16x384xf32> -> vector<16x384xf32>
    %c0_7 = arith.constant 0 : index
    %c0_8 = arith.constant 0 : index
    %28 = vector.load %arg3[%c0_7, %c0_8] : memref<1x384xf32, #tpu.memory_space<vmem>>, vector<1x384xf32>
    %29 = vector.broadcast %28 : vector<1x384xf32> to vector<16x384xf32>
    %30 = arith.addf %27, %29 : vector<16x384xf32>
    %cst_9 = arith.constant 0.000000e+00 : f32
    %31 = vector.broadcast %cst_9 : f32 to vector<16x384xf32>
    %32 = arith.maximumf %30, %31 : vector<16x384xf32>
    %33 = vector.extract_strided_slice %32 {offsets = [0, 0], sizes = [16, 128], strides = [1, 1]} : vector<16x384xf32> to vector<16x128xf32>
    %c0_10 = arith.constant 0 : index
    %c0_11 = arith.constant 0 : index
    %34 = vector.load %arg6[%c0_10, %c0_11] : memref<16x384xf32, #tpu.memory_space<vmem>>, vector<16x128xf32>
    tpu.vector_store %arg6[%c0_10, %c0_11], %33 {strides = array<i32>} : memref<16x384xf32, #tpu.memory_space<vmem>>, vector<16x128xf32>,
    %35 = vector.extract_strided_slice %32 {offsets = [0, 128], sizes = [16, 128], strides = [1, 1]} : vector<16x384xf32> to vector<16x128xf32>
    %36 = arith.truncf %35 : vector<16x128xf32> to vector<16x128xbf16>
    %c0_12 = arith.constant 0 : index
    %c0_13 = arith.constant 0 : index
    %c0_14 = arith.constant 0 : index
    %37 = vector.load %arg4[%c0_12, %c0_13, %c0_14] : memref<4x128x384xbf16, #tpu.memory_space<vmem>>, vector<1x128x384xbf16>
    %38 = vector.shape_cast %37 : vector<1x128x384xbf16> to vector<128x384xbf16>
    %cst_15 = arith.constant dense<0.000000e+00> : vector<16x384xf32>
    %39 = tpu.matmul %36, %38, %cst_15 {dimension_numbers = #tpu.dot_dimension_numbers<[1], [0], [0], [1], [0, 0, 1, 1], [], []>} : vector<16x128xbf16>, vector<128x384xbf16>, vector<16x384xf32> -> vector<16x384xf32>
    %40 = vector.extract_strided_slice %39 {offsets = [0, 0], sizes = [16, 128], strides = [1, 1]} : vector<16x384xf32> to vector<16x128xf32>
    %c1_i32_16 = arith.constant 1 : i32
    %41 = tpu.dynamic_rotate %40 by %c1_i32_16 dim 0 : vector<16x128xf32>, i32 -> vector<16x128xf32>
    %42 = vector.extract_strided_slice %39 {offsets = [0, 128], sizes = [16, 128], strides = [1, 1]} : vector<16x384xf32> to vector<16x128xf32>
    %43 = vector.extract_strided_slice %39 {offsets = [0, 256], sizes = [16, 128], strides = [1, 1]} : vector<16x384xf32> to vector<16x128xf32>
    %c15_i32_17 = arith.constant 15 : i32
    %44 = tpu.dynamic_rotate %43 by %c15_i32_17 dim 0 : vector<16x128xf32>, i32 -> vector<16x128xf32>
    %45 = vector.broadcast %20 : vector<16x1xf32> to vector<16x128xf32>
    %46 = arith.mulf %41, %45 : vector<16x128xf32>
    %47 = arith.addf %42, %46 : vector<16x128xf32>
    %48 = vector.broadcast %24 : vector<16x1xf32> to vector<16x128xf32>
    %49 = arith.mulf %44, %48 : vector<16x128xf32>
    %50 = arith.addf %47, %49 : vector<16x128xf32>
    %c0_18 = arith.constant 0 : index
    %c0_19 = arith.constant 0 : index
    %c0_20 = arith.constant 0 : index
    %51 = vector.load %arg5[%c0_18, %c0_19, %c0_20] : memref<4x1x128xf32, #tpu.memory_space<vmem>>, vector<1x1x128xf32>
    %52 = vector.shape_cast %51 : vector<1x1x128xf32> to vector<1x128xf32>
    %53 = vector.broadcast %52 : vector<1x128xf32> to vector<16x128xf32>
    %54 = arith.addf %50, %53 : vector<16x128xf32>
    %cst_21 = arith.constant 0.000000e+00 : f32
    %55 = vector.broadcast %cst_21 : f32 to vector<16x128xf32>
    %56 = arith.maximumf %54, %55 : vector<16x128xf32>
    %c0_22 = arith.constant 0 : index
    %c128 = arith.constant 128 : index
    %57 = vector.load %arg6[%c0_22, %c128] : memref<16x384xf32, #tpu.memory_space<vmem>>, vector<16x128xf32>
    tpu.vector_store %arg6[%c0_22, %c128], %56 {strides = array<i32>} : memref<16x384xf32, #tpu.memory_space<vmem>>, vector<16x128xf32>,
    %58 = vector.extract_strided_slice %32 {offsets = [0, 256], sizes = [16, 128], strides = [1, 1]} : vector<16x384xf32> to vector<16x128xf32>
    %59 = arith.truncf %58 : vector<16x128xf32> to vector<16x128xbf16>
    %c1 = arith.constant 1 : index
    %c0_23 = arith.constant 0 : index
    %c0_24 = arith.constant 0 : index
    %60 = vector.load %arg4[%c1, %c0_23, %c0_24] : memref<4x128x384xbf16, #tpu.memory_space<vmem>>, vector<1x128x384xbf16>
    %61 = vector.shape_cast %60 : vector<1x128x384xbf16> to vector<128x384xbf16>
    %cst_25 = arith.constant dense<0.000000e+00> : vector<16x384xf32>
    %62 = tpu.matmul %59, %61, %cst_25 {dimension_numbers = #tpu.dot_dimension_numbers<[1], [0], [0], [1], [0, 0, 1, 1], [], []>} : vector<16x128xbf16>, vector<128x384xbf16>, vector<16x384xf32> -> vector<16x384xf32>
    %63 = vector.extract_strided_slice %62 {offsets = [0, 0], sizes = [16, 128], strides = [1, 1]} : vector<16x384xf32> to vector<16x128xf32>
    %c1_i32_26 = arith.constant 1 : i32
    %64 = tpu.dynamic_rotate %63 by %c1_i32_26 dim 0 : vector<16x128xf32>, i32 -> vector<16x128xf32>
    %65 = vector.extract_strided_slice %62 {offsets = [0, 128], sizes = [16, 128], strides = [1, 1]} : vector<16x384xf32> to vector<16x128xf32>
    %66 = vector.extract_strided_slice %62 {offsets = [0, 256], sizes = [16, 128], strides = [1, 1]} : vector<16x384xf32> to vector<16x128xf32>
    %c15_i32_27 = arith.constant 15 : i32
    %67 = tpu.dynamic_rotate %66 by %c15_i32_27 dim 0 : vector<16x128xf32>, i32 -> vector<16x128xf32>
    %68 = vector.broadcast %20 : vector<16x1xf32> to vector<16x128xf32>
    %69 = arith.mulf %64, %68 : vector<16x128xf32>
    %70 = arith.addf %65, %69 : vector<16x128xf32>
    %71 = vector.broadcast %24 : vector<16x1xf32> to vector<16x128xf32>
    %72 = arith.mulf %67, %71 : vector<16x128xf32>
    %73 = arith.addf %70, %72 : vector<16x128xf32>
    %c1_28 = arith.constant 1 : index
    %c0_29 = arith.constant 0 : index
    %c0_30 = arith.constant 0 : index
    %74 = vector.load %arg5[%c1_28, %c0_29, %c0_30] : memref<4x1x128xf32, #tpu.memory_space<vmem>>, vector<1x1x128xf32>
    %75 = vector.shape_cast %74 : vector<1x1x128xf32> to vector<1x128xf32>
    %76 = vector.broadcast %75 : vector<1x128xf32> to vector<16x128xf32>
    %77 = arith.addf %73, %76 : vector<16x128xf32>
    %cst_31 = arith.constant 0.000000e+00 : f32
    %78 = vector.broadcast %cst_31 : f32 to vector<16x128xf32>
    %79 = arith.maximumf %77, %78 : vector<16x128xf32>
    %80 = arith.truncf %79 : vector<16x128xf32> to vector<16x128xbf16>
    %c2 = arith.constant 2 : index
    %c0_32 = arith.constant 0 : index
    %c0_33 = arith.constant 0 : index
    %81 = vector.load %arg4[%c2, %c0_32, %c0_33] : memref<4x128x384xbf16, #tpu.memory_space<vmem>>, vector<1x128x384xbf16>
    %82 = vector.shape_cast %81 : vector<1x128x384xbf16> to vector<128x384xbf16>
    %cst_34 = arith.constant dense<0.000000e+00> : vector<16x384xf32>
    %83 = tpu.matmul %80, %82, %cst_34 {dimension_numbers = #tpu.dot_dimension_numbers<[1], [0], [0], [1], [0, 0, 1, 1], [], []>} : vector<16x128xbf16>, vector<128x384xbf16>, vector<16x384xf32> -> vector<16x384xf32>
    %84 = vector.extract_strided_slice %83 {offsets = [0, 0], sizes = [16, 128], strides = [1, 1]} : vector<16x384xf32> to vector<16x128xf32>
    %c1_i32_35 = arith.constant 1 : i32
    %85 = tpu.dynamic_rotate %84 by %c1_i32_35 dim 0 : vector<16x128xf32>, i32 -> vector<16x128xf32>
    %86 = vector.extract_strided_slice %83 {offsets = [0, 128], sizes = [16, 128], strides = [1, 1]} : vector<16x384xf32> to vector<16x128xf32>
    %87 = vector.extract_strided_slice %83 {offsets = [0, 256], sizes = [16, 128], strides = [1, 1]} : vector<16x384xf32> to vector<16x128xf32>
    %c15_i32_36 = arith.constant 15 : i32
    %88 = tpu.dynamic_rotate %87 by %c15_i32_36 dim 0 : vector<16x128xf32>, i32 -> vector<16x128xf32>
    %89 = vector.broadcast %20 : vector<16x1xf32> to vector<16x128xf32>
    %90 = arith.mulf %85, %89 : vector<16x128xf32>
    %91 = arith.addf %86, %90 : vector<16x128xf32>
    %92 = vector.broadcast %24 : vector<16x1xf32> to vector<16x128xf32>
    %93 = arith.mulf %88, %92 : vector<16x128xf32>
    %94 = arith.addf %91, %93 : vector<16x128xf32>
    %c2_37 = arith.constant 2 : index
    %c0_38 = arith.constant 0 : index
    %c0_39 = arith.constant 0 : index
    %95 = vector.load %arg5[%c2_37, %c0_38, %c0_39] : memref<4x1x128xf32, #tpu.memory_space<vmem>>, vector<1x1x128xf32>
    %96 = vector.shape_cast %95 : vector<1x1x128xf32> to vector<1x128xf32>
    %97 = vector.broadcast %96 : vector<1x128xf32> to vector<16x128xf32>
    %98 = arith.addf %94, %97 : vector<16x128xf32>
    %cst_40 = arith.constant 0.000000e+00 : f32
    %99 = vector.broadcast %cst_40 : f32 to vector<16x128xf32>
    %100 = arith.maximumf %98, %99 : vector<16x128xf32>
    %101 = arith.truncf %100 : vector<16x128xf32> to vector<16x128xbf16>
    %c3 = arith.constant 3 : index
    %c0_41 = arith.constant 0 : index
    %c0_42 = arith.constant 0 : index
    %102 = vector.load %arg4[%c3, %c0_41, %c0_42] : memref<4x128x384xbf16, #tpu.memory_space<vmem>>, vector<1x128x384xbf16>
    %103 = vector.shape_cast %102 : vector<1x128x384xbf16> to vector<128x384xbf16>
    %cst_43 = arith.constant dense<0.000000e+00> : vector<16x384xf32>
    %104 = tpu.matmul %101, %103, %cst_43 {dimension_numbers = #tpu.dot_dimension_numbers<[1], [0], [0], [1], [0, 0, 1, 1], [], []>} : vector<16x128xbf16>, vector<128x384xbf16>, vector<16x384xf32> -> vector<16x384xf32>
    %105 = vector.extract_strided_slice %104 {offsets = [0, 0], sizes = [16, 128], strides = [1, 1]} : vector<16x384xf32> to vector<16x128xf32>
    %c1_i32_44 = arith.constant 1 : i32
    %106 = tpu.dynamic_rotate %105 by %c1_i32_44 dim 0 : vector<16x128xf32>, i32 -> vector<16x128xf32>
    %107 = vector.extract_strided_slice %104 {offsets = [0, 128], sizes = [16, 128], strides = [1, 1]} : vector<16x384xf32> to vector<16x128xf32>
    %108 = vector.extract_strided_slice %104 {offsets = [0, 256], sizes = [16, 128], strides = [1, 1]} : vector<16x384xf32> to vector<16x128xf32>
    %c15_i32_45 = arith.constant 15 : i32
    %109 = tpu.dynamic_rotate %108 by %c15_i32_45 dim 0 : vector<16x128xf32>, i32 -> vector<16x128xf32>
    %110 = vector.broadcast %20 : vector<16x1xf32> to vector<16x128xf32>
    %111 = arith.mulf %106, %110 : vector<16x128xf32>
    %112 = arith.addf %107, %111 : vector<16x128xf32>
    %113 = vector.broadcast %24 : vector<16x1xf32> to vector<16x128xf32>
    %114 = arith.mulf %109, %113 : vector<16x128xf32>
    %115 = arith.addf %112, %114 : vector<16x128xf32>
    %c3_46 = arith.constant 3 : index
    %c0_47 = arith.constant 0 : index
    %c0_48 = arith.constant 0 : index
    %116 = vector.load %arg5[%c3_46, %c0_47, %c0_48] : memref<4x1x128xf32, #tpu.memory_space<vmem>>, vector<1x1x128xf32>
    %117 = vector.shape_cast %116 : vector<1x1x128xf32> to vector<1x128xf32>
    %118 = vector.broadcast %117 : vector<1x128xf32> to vector<16x128xf32>
    %119 = arith.addf %115, %118 : vector<16x128xf32>
    %cst_49 = arith.constant 0.000000e+00 : f32
    %120 = vector.broadcast %cst_49 : f32 to vector<16x128xf32>
    %121 = arith.maximumf %119, %120 : vector<16x128xf32>
    %c0_50 = arith.constant 0 : index
    %c256 = arith.constant 256 : index
    %122 = vector.load %arg6[%c0_50, %c256] : memref<16x384xf32, #tpu.memory_space<vmem>>, vector<16x128xf32>
    tpu.vector_store %arg6[%c0_50, %c256], %121 {strides = array<i32>} : memref<16x384xf32, #tpu.memory_space<vmem>>, vector<16x128xf32>,
    return
  }
  func.func @transform_0(%arg0: i32) -> (i32, i32) {
    %c0_i32 = arith.constant 0 : i32
    %c0_i32_0 = arith.constant 0 : i32
    return %arg0, %c0_i32 : i32, i32
  }
  func.func @transform_1(%arg0: i32) -> (i32, i32) {
    %c0_i32 = arith.constant 0 : i32
    %c0_i32_0 = arith.constant 0 : i32
    %c0_i32_1 = arith.constant 0 : i32
    return %c0_i32, %c0_i32_0 : i32, i32
  }
  func.func @transform_2(%arg0: i32) -> (i32, i32) {
    %c0_i32 = arith.constant 0 : i32
    %c0_i32_0 = arith.constant 0 : i32
    %c0_i32_1 = arith.constant 0 : i32
    return %c0_i32, %c0_i32_0 : i32, i32
  }
  func.func @transform_3(%arg0: i32) -> (i32, i32, i32) {
    %c0_i32 = arith.constant 0 : i32
    %c0_i32_0 = arith.constant 0 : i32
    %c0_i32_1 = arith.constant 0 : i32
    %c0_i32_2 = arith.constant 0 : i32
    return %c0_i32, %c0_i32_0, %c0_i32_1 : i32, i32, i32
  }
  func.func @transform_4(%arg0: i32) -> (i32, i32, i32) {
    %c0_i32 = arith.constant 0 : i32
    %c0_i32_0 = arith.constant 0 : i32
    %c0_i32_1 = arith.constant 0 : i32
    %c0_i32_2 = arith.constant 0 : i32
    return %c0_i32, %c0_i32_0, %c0_i32_1 : i32, i32, i32
  }
  func.func @transform_5(%arg0: i32) -> (i32, i32) {
    %c0_i32 = arith.constant 0 : i32
    %c0_i32_0 = arith.constant 0 : i32
    return %arg0, %c0_i32 : i32, i32
  }
}

</mosaic_0001>

<bundles_post_ra>
// kernel: tpu_custom_call.1
= control target key start
LH: loop header
LB: loop body
LE: loop exit
PB: predicated region body
PF: predicated region fallthrough
CT: control target
= control target key end

     0   :  { %10 = vsyncpa [#allocation3], 0  ;;  %s2448_s0 = inlined_call_operand.vmem [shape: bf16[32,4], index: 0, kind: input, shape index: {}]   ;;  %s2449_s1 = inlined_call_operand.vmem [shape: bf16[4,384], index: 1, kind: input, shape index: {}]   ;;  %s2450_s2 = inlined_call_operand.vmem [shape: f32[1,384], index: 2, kind: input, shape index: {}]   ;;  %s2451_s3 = inlined_call_operand.hbm [shape: bf16[4,128,384], index: 3, kind: input, shape index: {}]   ;;  %s2452_s4 = inlined_call_operand.vmem [shape: f32[4,1,128], index: 4, kind: input, shape index: {}]   ;;  %s2453_s5 = inlined_call_operand.hbm [shape: f32[32,384], index: 5, kind: output, shape index: {}]  }
   0x1   :  { %11 = vsyncpa [#allocation4], 0 }
   0x2   :  { %13 = vsyncpa [#allocation4 + $0x1], 0  ;;  %s2186_s18 = smov 0   ;;  %s2188_s19 = smov 0  }
   0x3   :  { %s2190_s20 = smov 0   ;;  %s2192_s21 = smov 0  }
   0x4 LB: > { %s2207_s22 = sadd.s32 4294967295, %s2144_s21   ;;  %s1618_s23 = sadd.s32 4294967294, %s2144_s21   ;;  %s2144_s21 = sphi %s2192_s21, %s2461_s21   ;;  %s2140_s20 = sphi %s2190_s20, %s2460_s20   ;;  %s2136_s19 = sphi %s2188_s19, %s2459_s19   ;;  %s2132_s18 = sphi %s2186_s18, %s2458_s18  }
   0x5   : > { %s2211_s24 = sadd.s32 1, %s2144_s21   ;;  %s136_s25 = sadd.s32 1, %s2140_s20 }
   0x6   : > { %s133_s26 = ssub.s32 %s2144_s21, %s2211_s24  ;;  %p146_p0 = scmp.ne.s32.totalorder %s2140_s20, %s2136_s19 }
   0x7   : > { %p134_p1 = scmp.eq.s32.totalorder %s133_s26, 0  ;;  %p147_p2 = scmp.eq.s32.totalorder %s2207_s22, 1 }
   0x8   : > { %p152_p3 = scmp.ne.s32.totalorder %s2136_s19, %s2132_s18  ;;  %p153_p4 = scmp.eq.s32.totalorder %s1618_s23, 1 }
   0x9   : > { %s2222_s27 = scalar_select %p134_p1, %s2140_s20, %s136_s25  }
   0xa   : > { %p2224_p5 = por %p147_p2, %p146_p0  ;;  %p2228_p6 = por %p153_p4, %p152_p3 }
   0xb   : > { %p1619_p7 = scmp.ge.s32.totalorder %s2144_s21, 1  ;;  %p160_p8 = scmp.lt.s32.totalorder %s2144_s21, 3 }
   0xc   : > { %s2455_s29 = scalar_select %p2228_p6, 1, 0 }
   0xd   : > { %p1880_p9 = scmp.eq.s32.totalorder %s2207_s22, 0  ;;  %p2235_p10 = pnand %p1619_p7, %p160_p8 }
   0xe   : > { %s2146_s6 = smov [#allocation2]  }
   0xf   : > { %s178_s7 = sshll.u32 %s2146_s6, 4  ;;  %p1872_p11 = pneg %p2235_p10  ;;  %s179_s7 = int_to_ptr.vmem [resolvable:$true] %s178_s7 }
  0x10   : > { %s2065_s8 = scalar_lea.vmem %s179_s7, 12288  ;;  %p2073_p3 = scmp.lt.s32.totalorder %s179_s7, %s179_s7 }
  0x11   : > { %p1873_p12 = pnand %p1880_p9, %p1872_p11  ;;  %p2066_p0 = scmp.ne.s32.totalorder %s179_s7, %s2065_s8 }
  0x12   : > { %p2074_p4 = scmp.lt.s32.totalorder %s2065_s8, %s2065_s8 }
  0x13   : > { %p2056_p13 = pneg %p1873_p12 }
  0x14   : > { %p2075_p6 = por %p2074_p4, %p2073_p3 }
  0x15   : > { %p2068_p1 = pnand %p2066_p0, %p2056_p13 }
  0x17   : > { %p2069_p2 = pneg %p2068_p1 }
  0x19   : > { %p2076_p7 = pnand %p2075_p6, %p2069_p2 }
  0x1b   : > { %2079 = shalt.err (!%p2076_p7)
}
  0x1c   : > { %s2147_s9 = smov 192   ;;  %s2148_s10 = smov 12  }
  0x1d   : > { %1875 = dma.hbm_to_vmem [thread:$0]  (!%p1873_p12), %s2451_s3, 12288, %s179_s7, [#allocation3], %s2147_s9, %s2147_s9, %s2148_s10  }
  0x1e   : > { %206 = sbr.rel (%p2235_p10) target bundleno = 936 (0x3a8), region = 40 }
  0x23   : > { %2123 = dma.done.wait (%p1880_p9), [#allocation3], 12288  }
  0x24   : > { %2125 = vsyncadd (%p1880_p9), [#allocation3], 4294955008  ;;  %v242_v0 = vlaneseq  ;;  %v2149_v1 = vmov 1983009808   ;;  %v2150_v3 = vmov 0   ;;  %s1624_s13 = sshll.u32 %s2207_s22, 1 }
  0x25   : > { %v309_v2 = vunpack.c.l.s4 %v2149_v1  ;;  %369 = vmatprep.mubr.bf16.mxu0 %v2150_v3  ;;  %p235_p6 = scmp.lt.s32.totalorder %s1624_s13, 3  ;;  %v2151_v5 = vmov 0.0   ;;  %vm2152_vm0 = vmmov 0   ;;  %v283_v8 = vld [vmem:[%s2449_s1] sm:$0x3f]  ;;  %vm327_vm1 = vcmask 1041408  }
  0x26   : > { %v2254_v4 = vshrl.u32 %v242_v0, 7  ;;  %1778 = vmatprep.subr.bf16.mxu1 %v2151_v5  ;;  %1780 = vmatprep.mubr.msk.bf16.mxu1 %vm2152_vm0, %v2151_v5  ;;  %v307_v10 = vcombine.high %v283_v8, %v283_v8  ;;  %v1928_v14 = vld [vmem:[#allocation2 + $0xac] ss:$12 sps:$4 sm:$0xff]   ;;  %vm323_vm2 = vcmask 31744   ;;  %v1926_v17 = vld [vmem:[#allocation2 + $0xa8] ss:$12 sps:$4 sm:$0xff]  }
  0x27   : > { %v310_v6 = vunpack.c.0.s8 %v309_v2  ;;  %s2463_s13 = smov (!%p235_p6, %s1624_s13), 3  ;;  %v1929_v18 = vld [vmem:[#allocation2 + $0xb0] ss:$12 sps:$4 sm:$0xff]   ;;  %v1932_v19 = vld [vmem:[#allocation2 + $0x94] ss:$12 sps:$4 sm:$0xff]   ;;  %s231_s6 = sand.u32 1, %s2136_s19  }
  0x28   : > { %s1625_s14 = sshll.u32 %s2463_s13, 2  ;;  %v1930_v20 = vld [vmem:[#allocation2 + $0x90] ss:$12 sps:$4 sm:$0xff]   ;;  %v1933_v21 = vld [vmem:[#allocation2 + $0x98] ss:$12 sps:$4 sm:$0xff]   ;;  %v288_v41 = vsub.s32 0, %v2254_v4 }
  0x29   : > { %v313_v7 = vsub.s32 %v310_v6, %v2254_v4  ;;  %s238_s25 = scalar_lea.vmem %s2448_s0, %s1625_s14  ;;  %v1936_v22 = vld [vmem:[#allocation2 + $0x7c] ss:$12 sps:$4 sm:$0xff]   ;;  %v1934_v23 = vld [vmem:[#allocation2 + $0x78] ss:$12 sps:$4 sm:$0xff]   ;;  %v1937_v24 = vld [vmem:[#allocation2 + $0x80] ss:$12 sps:$4 sm:$0xff]  }
  0x2a   : > { %v1924_v15 = vld [vmem:[%s238_s25] sm:$0xff]   ;;  %v1941_v27 = vld [vmem:[#allocation2 + $0x68] ss:$12 sps:$4 sm:$0xff]   ;;  %v1944_v28 = vld [vmem:[#allocation2 + $0x4c] ss:$12 sps:$4 sm:$0xff]   ;;  %v292_v44 = vsub.s32 1, %v2254_v4 }
  0x2b   : > { %v314_v9 = vrot.slane %v283_v8, %v313_v7  ;;  %v321_v13 = vrot.slane %v307_v10, %v313_v7  ;;  %v1940_v25 = vld [vmem:[#allocation2 + $0x64] ss:$12 sps:$4 sm:$0xff]   ;;  %v1938_v26 = vld [vmem:[#allocation2 + $0x60] ss:$12 sps:$4 sm:$0xff]   ;;  %v1942_v29 = vld [vmem:[#allocation2 + $0x48] ss:$12 sps:$4 sm:$0xff]  }
  0x2c   : > { %v1945_v30 = vld [vmem:[#allocation2 + $0x50] ss:$12 sps:$4 sm:$0xff]   ;;  %v1948_v31 = vld [vmem:[#allocation2 + $0x34] ss:$12 sps:$4 sm:$0xff]   ;;  %v1949_v33 = vld [vmem:[#allocation2 + $0x38] ss:$12 sps:$4 sm:$0xff]  }
  0x2d   : > { %v322_v11 = vcombine.high %v314_v9, %v314_v9  ;;  %v329_v12 = vsel %vm327_vm1, %v314_v9, 0  ;;  %v335_v16 = vsel %vm327_vm1, %v321_v13, 0  ;;  %v1946_v32 = vld [vmem:[#allocation2 + $0x30] ss:$12 sps:$4 sm:$0xff]   ;;  %v1950_v35 = vld [vmem:[#allocation2 + $0x18] ss:$12 sps:$4 sm:$0xff]  }
  0x2e   : > { %1779 = vmatpush3.bf16.msra.mxu1 %v335_v16  ;;  %v1952_v34 = vld [vmem:[#allocation2 + $0x1c] ss:$12 sps:$4 sm:$0xff]   ;;  %v1953_v36 = vld [vmem:[#allocation2 + $0x20] ss:$12 sps:$4 sm:$0xff]   ;;  %v1956_v37 = vld [vmem:[#allocation2 + $0x4] ss:$12 sps:$4 sm:$0xff]  }
  0x2f   : > { %1629 = vmatprep.subr.msk.bf16.mxu0 %vm327_vm1, %v322_v11  ;;  %1784 = vmatprep.subr.bf16.mxu1 %v2151_v5  ;;  %v1954_v38 = vld [vmem:[#allocation2] ss:$12 sps:$4 sm:$0xff]   ;;  %v1957_v39 = vld [vmem:[#allocation2 + $0x8] ss:$12 sps:$4 sm:$0xff]   ;;  %s1864_s7 = smul.u32 48, %s231_s6  ;;  %v296_v16 = vsub.s32 2, %v2254_v4 }
  0x30   : > { %352 = vmatpush1.bf16.msra.mxu0 %v329_v12  ;;  %v1960_v40 = vld [vmem:[#allocation2 + $0x16c] ss:$12 sps:$4 sm:$0xff]   ;;  %v2282_v42 = vld [vmem:[%s2450_s2] sm:$0x7]  ;;  %v1958_v62 = vld [vmem:[#allocation2 + $0x168] ss:$12 sps:$4 sm:$0xff]  }
  0x31   : > { %590 = vmatprep.subr.bf16.mxu0 %v1928_v14  ;;  %1781 = vmatmul.mubr.msk.bf16.vlgmr.msra.gmra.mxu1 %vm323_vm2, %v1924_v15  ;;  %v289_v43 = vrot.slane %v2282_v42, %v288_v41  ;;  %v293_v48 = vrot.slane %v2282_v42, %v292_v44  ;;  %s2292_s8 = scalar_lea.vmem [#allocation5], %s1864_s7  ;;  %v1961_v63 = vld [vmem:[#allocation2 + $0x170] ss:$12 sps:$4 sm:$0xff]   ;;  %v1964_v1 = vld [vmem:[#allocation2 + $0x154] ss:$12 sps:$4 sm:$0xff]   ;;  %vm676_vm5 = vcmp.lt.s32.totalorder %v2254_v4, 1 }
  0x32   : > { %1785 = vmatpush3.bf16.msra.mxu1 %v1929_v18  ;;  %1800 = vmatprep.mubr.msk.bf16.mxu1 %vm2152_vm0, %v2151_v5  ;;  %v1962_v2 = vld [vmem:[#allocation2 + $0x150] ss:$12 sps:$4 sm:$0xff]   ;;  %v1965_v6 = vld [vmem:[#allocation2 + $0x158] ss:$12 sps:$4 sm:$0xff]   ;;  %v1969_v9 = vld [vmem:[#allocation2 + $0x140] ss:$12 sps:$4 sm:$0xff]  }
  0x33   : > { %1630 = vmatmul.mubr.msk.bf16.vlgmr.msra.gmra.mxu0 %vm323_vm2, %v1924_v15  ;;  %1786 = vmatprep.subr.bf16.mxu1 %v2151_v5  ;;  %v1968_v7 = vld [vmem:[#allocation2 + $0x13c] ss:$12 sps:$4 sm:$0xff]   ;;  %v1966_v8 = vld [vmem:[#allocation2 + $0x138] ss:$12 sps:$4 sm:$0xff]   ;;  %v1970_v11 = vld [vmem:[#allocation2 + $0x120] ss:$12 sps:$4 sm:$0xff]  }
  0x34   : > { %591 = vmatpush1.bf16.msra.mxu0 %v1926_v17  ;;  %622 = vmatprep.mubr.bf16.mxu0 %v2150_v3  ;;  %v1972_v10 = vld [vmem:[#allocation2 + $0x124] ss:$12 sps:$4 sm:$0xff]   ;;  %v1973_v12 = vld [vmem:[#allocation2 + $0x128] ss:$12 sps:$4 sm:$0xff]   ;;  %v1976_v13 = vld [vmem:[#allocation2 + $0x10c] ss:$12 sps:$4 sm:$0xff]  }
  0x35   : > { %592 = vmatprep.subr.bf16.mxu0 %v1932_v19  ;;  %v1974_v14 = vld [vmem:[#allocation2 + $0x108] ss:$12 sps:$4 sm:$0xff]   ;;  %v1977_v15 = vld [vmem:[#allocation2 + $0x110] ss:$12 sps:$4 sm:$0xff]   ;;  %v1981_v19 = vld [vmem:[#allocation2 + $0xf8] ss:$12 sps:$4 sm:$0xff]  }
  0x36   : > { %1787 = vmatpush3.bf16.msra.mxu1 %v1933_v21  ;;  %v1980_v17 = vld [vmem:[#allocation2 + $0xf4] ss:$12 sps:$4 sm:$0xff]   ;;  %v1978_v18 = vld [vmem:[#allocation2 + $0xf0] ss:$12 sps:$4 sm:$0xff]   ;;  %v2008_v44 = vld [vmem:[#allocation2 + $0x1cc] ss:$12 sps:$4 sm:$0xff]  }
  0x37   : > { %1788 = vmatprep.subr.bf16.mxu1 %v2151_v5  ;;  %v1984_v21 = vld [vmem:[#allocation2 + $0xdc] ss:$12 sps:$4 sm:$0xff]   ;;  %v2004_v41 = vld [vmem:[#allocation2 + $0x1e4] ss:$12 sps:$4 sm:$0xff]   ;;  %vm681_vm6 = vcmp.lt.s32.totalorder %v2254_v4, 7  ;;  %s1865_s17 = smul.u32 768, %s2207_s22 }
  0x38   : > { %593 = vmatpush1.bf16.msra.mxu0 %v1930_v20  ;;  %v297_v20 = vrot.slane %v2282_v42, %v296_v16  ;;  %v2002_v42 = vld [vmem:[#allocation2 + $0x1e0] ss:$12 sps:$4 sm:$0xff]   ;;  %s1544_s23 = sshll.u32 %s2292_s8, 4  ;;  %s2408_s22 = scalar_lea.sflag [#allocation4], %s231_s6  ;;  %s2397_s23 = int_to_ptr.vmem [resolvable:$true] %s1544_s23 }
  0x39   : > { %594 = vmatprep.subr.bf16.mxu0 %v1936_v22  ;;  %v1982_v22 = vld [vmem:[#allocation2 + $0xd8] ss:$12 sps:$4 sm:$0xff]   ;;  %s2402_s30 = scalar_lea.hbm %s2453_s5, %s1865_s17  ;;  %s2080_s7 = scalar_lea.vmem %s2397_s23, 768 }
  0x3a   : > { %1789 = vmatpush3.bf16.msra.mxu1 %v1937_v24  ;;  %p2081_p8 = scmp.ne.s32.totalorder %s2397_s23, %s2080_s7  ;;  %s2153_s9 = smov [#allocation5]  }
  0x3b   : > { %1790 = vmatprep.subr.bf16.mxu1 %v2151_v5  ;;  %s2084_s10 = sshll.u32 %s2153_s9, 4  ;;  %s2085_s10 = int_to_ptr.vmem [resolvable:$false] %s2084_s10 }
  0x3c   : > { %595 = vmatpush1.bf16.msra.mxu0 %v1934_v23  ;;  %v1985_v23 = vld [vmem:[#allocation2 + $0xe0] ss:$12 sps:$4 sm:$0xff]   ;;  %p2082_p9 = pnand %p2081_p8, %p2224_p5  ;;  %s2086_s11 = scalar_lea.vmem %s2085_s10, 1536 }
  0x3d   : > { %596 = vmatprep.subr.bf16.mxu0 %v1940_v25  ;;  %p2087_p11 = scmp.lt.s32.totalorder %s2397_s23, %s2085_s10  ;;  %p2088_p12 = scmp.lt.s32.totalorder %s2086_s11, %s2080_s7 }
  0x3e   : > { %1791 = vmatpush3.bf16.msra.mxu1 %v1941_v27  ;;  %v1986_v27 = vld [vmem:[#allocation2 + $0xc0] ss:$12 sps:$4 sm:$0xff]   ;;  %p2083_p10 = pneg %p2082_p9 }
  0x3f   : > { %1792 = vmatprep.subr.bf16.mxu1 %v2151_v5  ;;  %p2089_p13 = por %p2088_p12, %p2087_p11 }
  0x40   : > { %597 = vmatpush1.bf16.msra.mxu0 %v1938_v26  ;;  %v1988_v26 = vld [vmem:[#allocation2 + $0xc4] ss:$12 sps:$4 sm:$0xff]  }
  0x41   : > { %598 = vmatprep.subr.bf16.mxu0 %v1944_v28  ;;  %v1989_v28 = vld [vmem:[#allocation2 + $0xc8] ss:$12 sps:$4 sm:$0xff]   ;;  %p2090_p0 = pnand %p2089_p13, %p2083_p10 }
  0x42   : > { %1793 = vmatpush3.bf16.msra.mxu1 %v1945_v30 }
  0x43   : > { %1794 = vmatprep.subr.bf16.mxu1 %v2151_v5 }
  0x44   : > { %599 = vmatpush1.bf16.msra.mxu0 %v1942_v29 }
  0x45   : > { %600 = vmatprep.subr.bf16.mxu0 %v1948_v31 }
  0x46   : > { %1795 = vmatpush3.bf16.msra.mxu1 %v1949_v33  ;;  %v1992_v33 = vld [vmem:[#allocation2 + $0x22c] ss:$12 sps:$4 sm:$0xff]  }
  0x47   : > { %1796 = vmatprep.subr.bf16.mxu1 %v2151_v5 }
  0x48   : > { %601 = vmatpush1.bf16.msra.mxu0 %v1946_v32  ;;  %v1990_v32 = vld [vmem:[#allocation2 + $0x228] ss:$12 sps:$4 sm:$0xff]  }
  0x49   : > { %602 = vmatprep.subr.bf16.mxu0 %v1952_v34  ;;  %v1993_v34 = vld [vmem:[#allocation2 + $0x230] ss:$12 sps:$4 sm:$0xff]  }
  0x4a   : > { %1797 = vmatpush3.bf16.msra.mxu1 %v1953_v36  ;;  %v1997_v36 = vld [vmem:[#allocation2 + $0x218] ss:$12 sps:$4 sm:$0xff]  }
  0x4b   : > { %1798 = vmatprep.subr.bf16.mxu1 %v2151_v5 }
  0x4c   : > { %603 = vmatpush1.bf16.msra.mxu0 %v1950_v35  ;;  %v1996_v35 = vld [vmem:[#allocation2 + $0x214] ss:$12 sps:$4 sm:$0xff]  }
  0x4d   : > { %604 = vmatprep.subr.bf16.mxu0 %v1956_v37  ;;  %v1994_v37 = vld [vmem:[#allocation2 + $0x210] ss:$12 sps:$4 sm:$0xff]  }
  0x4e   : > { %1799 = vmatpush3.bf16.msra.mxu1 %v1957_v39  ;;  %v2001_v39 = vld [vmem:[#allocation2 + $0x200] ss:$12 sps:$4 sm:$0xff]  }
  0x4f   : > { %1804 = vmatprep.subr.bf16.mxu1 %v2151_v5 }
  0x50   : > { %605 = vmatpush1.bf16.msra.mxu0 %v1954_v38  ;;  %v2000_v38 = vld [vmem:[#allocation2 + $0x1fc] ss:$12 sps:$4 sm:$0xff]  }
  0x51   : > { %867 = vmatprep.subr.bf16.mxu0 %v1960_v40  ;;  %v1998_v40 = vld [vmem:[#allocation2 + $0x1f8] ss:$12 sps:$4 sm:$0xff]  }
  0xf1   : > { %v2289_v46 = vpop.f32.mrf.mxu1 }
  0xf2   : > { %v415_v24 = vadd.f32 %v2289_v46, %v297_v20  ;;  %v2009_v46 = vld [vmem:[#allocation2 + $0x1d0] ss:$12 sps:$4 sm:$0xff]  }
  0xf3   : > { %v371_v45 = vpop.f32.mrf.mxu0  ;;  %v1782_v50 = vpop.f32.mrf.mxu1 }
  0xf4   : > { %v372_v47 = vadd.f32 %v371_v45, %v289_v43  ;;  %v423_v29 = vmax.f32 %v415_v24, 0.0  ;;  %v2006_v45 = vld [vmem:[#allocation2 + $0x1c8] ss:$12 sps:$4 sm:$0xff]  }
  0xf5   : > { %v373_v49 = vpop.f32.mrf.mxu0  ;;  %v417_v53 = vpop.f32.mrf.mxu1  ;;  %v2016_v50 = vld [vmem:[#allocation2 + $0x19c] ss:$12 sps:$4 sm:$0xff]  }
  0xf6   : > { %v421_v51 = vmax.f32 %v372_v47, 0.0  ;;  %v374_v54 = vadd.f32 %v373_v49, %v293_v48  ;;  %v418_v25 = vadd.f32 %v417_v53, %v297_v20  ;;  %v2012_v47 = vld [vmem:[#allocation2 + $0x1b4] ss:$12 sps:$4 sm:$0xff]   ;;  %v2013_v49 = vld [vmem:[#allocation2 + $0x1b8] ss:$12 sps:$4 sm:$0xff]  }
  0xf7   : > { %v375_v52 = vpop.f32.mrf.mxu0  ;;  %v1783_v57 = vpop.f32.mrf.mxu1  ;;  %v2020_v53 = vld [vmem:[#allocation2 + $0x184] ss:$12 sps:$4 sm:$0xff]  }
  0xf8   : > { %427 = vst [vmem:[%s2292_s8] sm:$0xff] %v421_v51  ;;  %v376_v55 = vadd.f32 %v375_v52, %v289_v43  ;;  %v422_v60 = vmax.f32 %v374_v54, 0.0  ;;  %v426_v30 = vmax.f32 %v418_v25, 0.0  ;;  %v2005_v43 = vld [vmem:[#allocation2 + $0x1e8] ss:$12 sps:$4 sm:$0xff]   ;;  %v2014_v51 = vld [vmem:[#allocation2 + $0x198] ss:$12 sps:$4 sm:$0xff]  }
  0xf9   : > { %v377_v56 = vpop.f32.mrf.mxu0  ;;  %v2017_v52 = vld [vmem:[#allocation2 + $0x1a0] ss:$12 sps:$4 sm:$0xff]   ;;  %v244_v57 = vadd.s32 8, %v2254_v4 }
  0xfa   : > { %v424_v58 = vmax.f32 %v376_v55, 0.0  ;;  %v378_v59 = vadd.f32 %v377_v56, %v293_v48  ;;  %v705_v31 = vpack.c.bf16 %v426_v30, %v423_v29  ;;  %v2010_v48 = vld [vmem:[#allocation2 + $0x1b0] ss:$12 sps:$4 sm:$0xff]   ;;  %v2018_v54 = vld [vmem:[#allocation2 + $0x180] ss:$12 sps:$4 sm:$0xff]  }
  0xfb   : > { %v2021_v55 = vld [vmem:[#allocation2 + $0x188] ss:$12 sps:$4 sm:$0xff]   ;;  %v2024_v56 = vld [vmem:[#allocation2 + $0x2ec] ss:$12 sps:$4 sm:$0xff]  }
  0xfc   : > { %428 = vst [vmem:[%s2292_s8 + $0x18] sm:$0xff] %v424_v58  ;;  %v425_v61 = vmax.f32 %v378_v59, 0.0  ;;  %v249_v58 = vand.u32 15, %v2254_v4  ;;  %v256_v59 = vand.u32 15, %v244_v57 }
  0xfe   : > { %v429_v0 = vpack.c.bf16 %v425_v61, %v422_v60  ;;  %vm269_vm3 = vcmp.ne.s32.totalorder %v249_v58, 0  ;;  %vm276_vm4 = vcmp.ne.s32.totalorder %v256_v59, 15  ;;  %v2028_v58 = vld [vmem:[#allocation2 + $0x2d4] ss:$12 sps:$4 sm:$0xff]   ;;  %v2026_v59 = vld [vmem:[#allocation2 + $0x2d0] ss:$12 sps:$4 sm:$0xff]  }
 0x100   : > { %623 = vmatmul.mubr.bf16.vlgmr.msra.gmra.mxu0 %v429_v0  ;;  %1801 = vmatmul.mubr.bf16.vlgmr.msra.gmra.mxu1 %v429_v0  ;;  %v2324_v0 = vsel %vm269_vm3, 1.0, %v2151_v5 }
 0x101   : > { %868 = vmatpush1.bf16.msra.mxu0 %v1958_v62  ;;  %1805 = vmatpush3.bf16.msra.mxu1 %v1961_v63 }
 0x102   : > { %869 = vmatprep.subr.bf16.mxu0 %v1964_v1  ;;  %1806 = vmatprep.subr.bf16.mxu1 %v2151_v5 }
 0x103   : > { %899 = vmatprep.mubr.bf16.mxu0 %v2150_v3  ;;  %1820 = vmatprep.mubr.msk.bf16.mxu1 %vm2152_vm0, %v2151_v5 }
 0x105   : > { %870 = vmatpush1.bf16.msra.mxu0 %v1962_v2  ;;  %1807 = vmatpush3.bf16.msra.mxu1 %v1965_v6  ;;  %v2329_v6 = vsel %vm276_vm4, 1.0, %v2151_v5 }
 0x106   : > { %871 = vmatprep.subr.bf16.mxu0 %v1968_v7  ;;  %1808 = vmatprep.subr.bf16.mxu1 %v2151_v5 }
 0x109   : > { %872 = vmatpush1.bf16.msra.mxu0 %v1966_v8  ;;  %1809 = vmatpush3.bf16.msra.mxu1 %v1969_v9 }
 0x10a   : > { %873 = vmatprep.subr.bf16.mxu0 %v1972_v10  ;;  %1810 = vmatprep.subr.bf16.mxu1 %v2151_v5 }
 0x10d   : > { %874 = vmatpush1.bf16.msra.mxu0 %v1970_v11  ;;  %1811 = vmatpush3.bf16.msra.mxu1 %v1973_v12 }
 0x10e   : > { %875 = vmatprep.subr.bf16.mxu0 %v1976_v13  ;;  %1812 = vmatprep.subr.bf16.mxu1 %v2151_v5 }
 0x111   : > { %876 = vmatpush1.bf16.msra.mxu0 %v1974_v14  ;;  %1813 = vmatpush3.bf16.msra.mxu1 %v1977_v15 }
 0x112   : > { %877 = vmatprep.subr.bf16.mxu0 %v1980_v17  ;;  %1814 = vmatprep.subr.bf16.mxu1 %v2151_v5 }
 0x115   : > { %878 = vmatpush1.bf16.msra.mxu0 %v1978_v18  ;;  %1815 = vmatpush3.bf16.msra.mxu1 %v1981_v19  ;;  %v1656_v19 = vld [vmem:[%s2452_s4] ss:$0 sm:$0xff] }
 0x116   : > { %879 = vmatprep.subr.bf16.mxu0 %v1984_v21  ;;  %1816 = vmatprep.subr.bf16.mxu1 %v2151_v5 }
 0x119   : > { %880 = vmatpush1.bf16.msra.mxu0 %v1982_v22  ;;  %1817 = vmatpush3.bf16.msra.mxu1 %v1985_v23 }
 0x11a   : > { %881 = vmatprep.subr.bf16.mxu0 %v1988_v26  ;;  %1818 = vmatprep.subr.bf16.mxu1 %v2151_v5 }
 0x11d   : > { %882 = vmatpush1.bf16.msra.mxu0 %v1986_v27  ;;  %1819 = vmatpush3.bf16.msra.mxu1 %v1989_v28 }
 0x11e   : > { %1824 = vmatprep.subr.bf16.mxu1 %v2151_v5  ;;  %1141 = vmatprep.subr.bf16.mxu0 %v1992_v33 }
 0x120   : > { %900 = vmatmul.mubr.bf16.vlgmr.msra.gmra.mxu0 %v705_v31  ;;  %1821 = vmatmul.mubr.bf16.vlgmr.msra.gmra.mxu1 %v705_v31 }
 0x121   : > { %1173 = vmatprep.mubr.bf16.mxu0 %v2150_v3  ;;  %1840 = vmatprep.mubr.msk.bf16.mxu1 %vm2152_vm0, %v2151_v5 }
 0x122   : > { %1825 = vmatpush3.bf16.msra.mxu1 %v1993_v34  ;;  %1142 = vmatpush1.bf16.msra.mxu0 %v1990_v32 }
 0x123   : > { %1826 = vmatprep.subr.bf16.mxu1 %v2151_v5  ;;  %1143 = vmatprep.subr.bf16.mxu0 %v1996_v35 }
 0x126   : > { %1827 = vmatpush3.bf16.msra.mxu1 %v1997_v36  ;;  %1144 = vmatpush1.bf16.msra.mxu0 %v1994_v37 }
 0x127   : > { %1828 = vmatprep.subr.bf16.mxu1 %v2151_v5  ;;  %1145 = vmatprep.subr.bf16.mxu0 %v2000_v38 }
 0x12a   : > { %1829 = vmatpush3.bf16.msra.mxu1 %v2001_v39  ;;  %1146 = vmatpush1.bf16.msra.mxu0 %v1998_v40 }
 0x12b   : > { %1830 = vmatprep.subr.bf16.mxu1 %v2151_v5  ;;  %1147 = vmatprep.subr.bf16.mxu0 %v2004_v41 }
 0x12e   : > { %1148 = vmatpush1.bf16.msra.mxu0 %v2002_v42  ;;  %1831 = vmatpush3.bf16.msra.mxu1 %v2005_v43 }
 0x12f   : > { %1832 = vmatprep.subr.bf16.mxu1 %v2151_v5  ;;  %1149 = vmatprep.subr.bf16.mxu0 %v2008_v44 }
 0x132   : > { %1150 = vmatpush1.bf16.msra.mxu0 %v2006_v45  ;;  %1833 = vmatpush3.bf16.msra.mxu1 %v2009_v46  ;;  %v1682_v46 = vld [vmem:[%s2452_s4 + $0x1] ss:$0 sm:$0xff] }
 0x133   : > { %1834 = vmatprep.subr.bf16.mxu1 %v2151_v5  ;;  %1151 = vmatprep.subr.bf16.mxu0 %v2012_v47 }
 0x136   : > { %1152 = vmatpush1.bf16.msra.mxu0 %v2010_v48  ;;  %1835 = vmatpush3.bf16.msra.mxu1 %v2013_v49 }
 0x137   : > { %1836 = vmatprep.subr.bf16.mxu1 %v2151_v5  ;;  %1153 = vmatprep.subr.bf16.mxu0 %v2016_v50 }
 0x13a   : > { %1154 = vmatpush1.bf16.msra.mxu0 %v2014_v51  ;;  %1837 = vmatpush3.bf16.msra.mxu1 %v2017_v52 }
 0x13b   : > { %1838 = vmatprep.subr.bf16.mxu1 %v2151_v5  ;;  %1155 = vmatprep.subr.bf16.mxu0 %v2020_v53 }
 0x13e   : > { %1156 = vmatpush1.bf16.msra.mxu0 %v2018_v54  ;;  %1839 = vmatpush3.bf16.msra.mxu1 %v2021_v55  ;;  %v2022_v55 = vld [vmem:[#allocation2 + $0x2e8] ss:$12 sps:$4 sm:$0xff]  }
 0x13f   : > { %1844 = vmatprep.subr.bf16.mxu1 %v2151_v5  ;;  %1415 = vmatprep.subr.bf16.mxu0 %v2024_v56  ;;  %v2025_v56 = vld [vmem:[#allocation2 + $0x2f0] ss:$12 sps:$4 sm:$0xff]  }
 0x1c0   : > { %v624_v60 = vpop.f32.mrf.mxu0  ;;  %v667_v61 = vpop.f32.mrf.mxu1 }
 0x1c1   : > { %v674_v7 = vrot.slane %v624_v60, 7  ;;  %v679_v8 = vrot.slane %v667_v61, 1  ;;  %v2029_v60 = vld [vmem:[#allocation2 + $0x2d8] ss:$12 sps:$4 sm:$0xff]   ;;  %v2032_v61 = vld [vmem:[#allocation2 + $0x2bc] ss:$12 sps:$4 sm:$0xff]  }
 0x1c2   : > { %v626_v62 = vpop.f32.mrf.mxu0  ;;  %v1802_v63 = vpop.f32.mrf.mxu1 }
 0x1c3   : > { %v2033_v63 = vld [vmem:[#allocation2 + $0x2c0] ss:$12 sps:$4 sm:$0xff]  }
 0x1c4   : > { %v628_v1 = vpop.f32.mrf.mxu0  ;;  %v670_v2 = vpop.f32.mrf.mxu1 }
 0x1c5   : > { %v675_v9 = vrot.slane %v628_v1, 7  ;;  %v680_v10 = vrot.slane %v670_v2, 1  ;;  %v2036_v1 = vld [vmem:[#allocation2 + $0x2a4] ss:$12 sps:$4 sm:$0xff]   ;;  %v2034_v2 = vld [vmem:[#allocation2 + $0x2a0] ss:$12 sps:$4 sm:$0xff]  }
 0x1c6   : > { %v630_v11 = vpop.f32.mrf.mxu0  ;;  %v1803_v12 = vpop.f32.mrf.mxu1 }
 0x1c7   : > { %v678_v13 = vsel %vm676_vm5, %v675_v9, %v674_v7  ;;  %v683_v14 = vsel %vm681_vm6, %v680_v10, %v679_v8  ;;  %v677_v15 = vsel %vm676_vm5, %v674_v7, %v675_v9  ;;  %v682_v22 = vsel %vm681_vm6, %v679_v8, %v680_v10  ;;  %v2037_v7 = vld [vmem:[#allocation2 + $0x2a8] ss:$12 sps:$4 sm:$0xff]   ;;  %v2041_v9 = vld [vmem:[#allocation2 + $0x290] ss:$12 sps:$4 sm:$0xff]   ;;  %v2045_v12 = vld [vmem:[#allocation2 + $0x278] ss:$12 sps:$4 sm:$0xff]  }
 0x1c8   : > { %v684_v16 = vmul.f32 %v2324_v0, %v678_v13  ;;  %v687_v17 = vadd.f32 %v677_v15, %v630_v11  ;;  %v689_v18 = vmul.f32 %v2329_v6, %v683_v14  ;;  %v2038_v8 = vld [vmem:[#allocation2 + $0x288] ss:$12 sps:$4 sm:$0xff]   ;;  %v2042_v11 = vld [vmem:[#allocation2 + $0x270] ss:$12 sps:$4 sm:$0xff]   ;;  %v2046_v14 = vld [vmem:[#allocation2 + $0x258] ss:$12 sps:$4 sm:$0xff]  }
 0x1c9   : > { %v2044_v10 = vld [vmem:[#allocation2 + $0x274] ss:$12 sps:$4 sm:$0xff]   ;;  %v2048_v13 = vld [vmem:[#allocation2 + $0x25c] ss:$12 sps:$4 sm:$0xff]  }
 0x1ca   : > { %v686_v20 = vadd.f32 %v684_v16, %v626_v62  ;;  %v691_v21 = vadd.f32 %v689_v18, %v687_v17  ;;  %v2030_v62 = vld [vmem:[#allocation2 + $0x2b8] ss:$12 sps:$4 sm:$0xff]   ;;  %v2049_v15 = vld [vmem:[#allocation2 + $0x260] ss:$12 sps:$4 sm:$0xff]   ;;  %v2053_v18 = vld [vmem:[#allocation2 + $0x248] ss:$12 sps:$4 sm:$0xff]  }
 0x1cb   : > { %v2052_v16 = vld [vmem:[#allocation2 + $0x244] ss:$12 sps:$4 sm:$0xff]   ;;  %v2050_v17 = vld [vmem:[#allocation2 + $0x240] ss:$12 sps:$4 sm:$0xff]  }
 0x1cc   : > { %v690_v23 = vadd.f32 %v686_v20, %v682_v22  ;;  %v700_v24 = vadd.f32 %v1656_v19, %v691_v21 }
 0x1ce   : > { %v699_v25 = vadd.f32 %v1656_v19, %v690_v23  ;;  %v702_v26 = vmax.f32 %v700_v24, 0.0 }
 0x1d0   : > { %v701_v27 = vmax.f32 %v699_v25, 0.0  ;;  %704 = vst [vmem:[%s2292_s8 + $0x20] sm:$0xff] %v702_v26 }
 0x1d2   : > { %703 = vst [vmem:[%s2292_s8 + $0x8] sm:$0xff] %v701_v27 }
 0x1e0   : > { %v901_v28 = vpop.f32.mrf.mxu0  ;;  %v944_v29 = vpop.f32.mrf.mxu1 }
 0x1e1   : > { %v951_v34 = vrot.slane %v901_v28, 7  ;;  %v955_v35 = vrot.slane %v944_v29, 1 }
 0x1e2   : > { %v903_v30 = vpop.f32.mrf.mxu0  ;;  %v1822_v31 = vpop.f32.mrf.mxu1 }
 0x1e4   : > { %v905_v32 = vpop.f32.mrf.mxu0  ;;  %v947_v33 = vpop.f32.mrf.mxu1 }
 0x1e5   : > { %v952_v36 = vrot.slane %v905_v32, 7  ;;  %v956_v37 = vrot.slane %v947_v33, 1 }
 0x1e6   : > { %v907_v38 = vpop.f32.mrf.mxu0  ;;  %v1823_v39 = vpop.f32.mrf.mxu1 }
 0x1e7   : > { %v954_v40 = vsel %vm676_vm5, %v952_v36, %v951_v34  ;;  %v958_v41 = vsel %vm681_vm6, %v956_v37, %v955_v35  ;;  %v953_v42 = vsel %vm676_vm5, %v951_v34, %v952_v36  ;;  %v957_v49 = vsel %vm681_vm6, %v955_v35, %v956_v37  ;;  %v1708_v36 = vld [vmem:[%s2452_s4 + $0x2] ss:$0 sm:$0xff] }
 0x1e8   : > { %v959_v43 = vmul.f32 %v2324_v0, %v954_v40  ;;  %v962_v44 = vadd.f32 %v953_v42, %v907_v38  ;;  %v964_v45 = vmul.f32 %v2329_v6, %v958_v41 }
 0x1ea   : > { %v961_v47 = vadd.f32 %v959_v43, %v903_v30  ;;  %v966_v48 = vadd.f32 %v964_v45, %v962_v44 }
 0x1ec   : > { %v965_v50 = vadd.f32 %v961_v47, %v957_v49  ;;  %v976_v51 = vadd.f32 %v1682_v46, %v966_v48 }
 0x1ee   : > { %v975_v52 = vadd.f32 %v1682_v46, %v965_v50  ;;  %v978_v54 = vmax.f32 %v976_v51, 0.0 }
 0x1f0   : > { %v977_v53 = vmax.f32 %v975_v52, 0.0 }
 0x1f2   : > { %v979_v57 = vpack.c.bf16 %v978_v54, %v977_v53 }
 0x1f4   : > { %1174 = vmatmul.mubr.bf16.vlgmr.msra.gmra.mxu0 %v979_v57  ;;  %1841 = vmatmul.mubr.bf16.vlgmr.msra.gmra.mxu1 %v979_v57 }
 0x1f5   : > { %1416 = vmatpush1.bf16.msra.mxu0 %v2022_v55  ;;  %1845 = vmatpush3.bf16.msra.mxu1 %v2025_v56 }
 0x1f6   : > { %1417 = vmatprep.subr.bf16.mxu0 %v2028_v58  ;;  %1846 = vmatprep.subr.bf16.mxu1 %v2151_v5 }
 0x1f7   : > { %1447 = vmatprep.mubr.bf16.mxu0 %v2150_v3  ;;  %1860 = vmatprep.mubr.msk.bf16.mxu1 %vm2152_vm0, %v2151_v5  ;;  %v2040_v3 = vld [vmem:[#allocation2 + $0x28c] ss:$12 sps:$4 sm:$0xff]  }
 0x1f9   : > { %1418 = vmatpush1.bf16.msra.mxu0 %v2026_v59  ;;  %1847 = vmatpush3.bf16.msra.mxu1 %v2029_v60 }
 0x1fa   : > { %1419 = vmatprep.subr.bf16.mxu0 %v2032_v61  ;;  %1848 = vmatprep.subr.bf16.mxu1 %v2151_v5 }
 0x1fd   : > { %1420 = vmatpush1.bf16.msra.mxu0 %v2030_v62  ;;  %1849 = vmatpush3.bf16.msra.mxu1 %v2033_v63 }
 0x1fe   : > { %1850 = vmatprep.subr.bf16.mxu1 %v2151_v5  ;;  %1421 = vmatprep.subr.bf16.mxu0 %v2036_v1  ;;  %v1734_v1 = vld [vmem:[%s2452_s4 + $0x3] ss:$0 sm:$0xff] }
 0x201   : > { %1422 = vmatpush1.bf16.msra.mxu0 %v2034_v2  ;;  %1851 = vmatpush3.bf16.msra.mxu1 %v2037_v7 }
 0x202   : > { %1852 = vmatprep.subr.bf16.mxu1 %v2151_v5  ;;  %1423 = vmatprep.subr.bf16.mxu0 %v2040_v3 }
 0x205   : > { %1424 = vmatpush1.bf16.msra.mxu0 %v2038_v8  ;;  %1853 = vmatpush3.bf16.msra.mxu1 %v2041_v9 }
 0x206   : > { %1854 = vmatprep.subr.bf16.mxu1 %v2151_v5  ;;  %1425 = vmatprep.subr.bf16.mxu0 %v2044_v10 }
 0x209   : > { %1426 = vmatpush1.bf16.msra.mxu0 %v2042_v11  ;;  %1855 = vmatpush3.bf16.msra.mxu1 %v2045_v12 }
 0x20a   : > { %1856 = vmatprep.subr.bf16.mxu1 %v2151_v5  ;;  %1427 = vmatprep.subr.bf16.mxu0 %v2048_v13 }
 0x20d   : > { %1428 = vmatpush1.bf16.msra.mxu0 %v2046_v14  ;;  %1857 = vmatpush3.bf16.msra.mxu1 %v2049_v15 }
 0x20e   : > { %1858 = vmatprep.subr.bf16.mxu1 %v2151_v5  ;;  %1429 = vmatprep.subr.bf16.mxu0 %v2052_v16 }
 0x211   : > { %1430 = vmatpush1.bf16.msra.mxu0 %v2050_v17  ;;  %1859 = vmatpush3.bf16.msra.mxu1 %v2053_v18 }
 0x2b4   : > { %v1175_v19 = vpop.f32.mrf.mxu0  ;;  %v1218_v20 = vpop.f32.mrf.mxu1 }
 0x2b5   : > { %v1225_v25 = vrot.slane %v1175_v19, 7  ;;  %v1229_v26 = vrot.slane %v1218_v20, 1 }
 0x2b6   : > { %v1177_v21 = vpop.f32.mrf.mxu0  ;;  %v1842_v22 = vpop.f32.mrf.mxu1 }
 0x2b8   : > { %v1179_v23 = vpop.f32.mrf.mxu0  ;;  %v1221_v24 = vpop.f32.mrf.mxu1 }
 0x2b9   : > { %v1226_v27 = vrot.slane %v1179_v23, 7  ;;  %v1230_v28 = vrot.slane %v1221_v24, 1 }
 0x2ba   : > { %v1181_v29 = vpop.f32.mrf.mxu0  ;;  %v1843_v30 = vpop.f32.mrf.mxu1 }
 0x2bb   : > { %v1228_v5 = vsel %vm676_vm5, %v1226_v27, %v1225_v25  ;;  %v1232_v31 = vsel %vm681_vm6, %v1230_v28, %v1229_v26  ;;  %v1227_v32 = vsel %vm676_vm5, %v1225_v25, %v1226_v27  ;;  %v1231_v39 = vsel %vm681_vm6, %v1229_v26, %v1230_v28 }
 0x2bc   : > { %v1233_v33 = vmul.f32 %v2324_v0, %v1228_v5  ;;  %v1236_v34 = vadd.f32 %v1227_v32, %v1181_v29  ;;  %v1238_v35 = vmul.f32 %v2329_v6, %v1232_v31 }
 0x2be   : > { %v1235_v37 = vadd.f32 %v1233_v33, %v1177_v21  ;;  %v1240_v38 = vadd.f32 %v1238_v35, %v1236_v34 }
 0x2c0   : > { %v1239_v40 = vadd.f32 %v1235_v37, %v1231_v39  ;;  %v1250_v41 = vadd.f32 %v1708_v36, %v1240_v38 }
 0x2c2   : > { %v1249_v42 = vadd.f32 %v1708_v36, %v1239_v40  ;;  %v1252_v44 = vmax.f32 %v1250_v41, 0.0 }
 0x2c4   : > { %v1251_v43 = vmax.f32 %v1249_v42, 0.0 }
 0x2c6   : > { %v1253_v45 = vpack.c.bf16 %v1252_v44, %v1251_v43 }
 0x2c8   : > { %1448 = vmatmul.mubr.bf16.vlgmr.msra.gmra.mxu0 %v1253_v45  ;;  %1861 = vmatmul.mubr.bf16.vlgmr.msra.gmra.mxu1 %v1253_v45 }
 0x388   : > { %v1449_v46 = vpop.f32.mrf.mxu0  ;;  %v1492_v47 = vpop.f32.mrf.mxu1 }
 0x389   : > { %v1499_v52 = vrot.slane %v1449_v46, 7  ;;  %v1503_v53 = vrot.slane %v1492_v47, 1 }
 0x38a   : > { %v1451_v48 = vpop.f32.mrf.mxu0  ;;  %v1862_v49 = vpop.f32.mrf.mxu1 }
 0x38c   : > { %v1453_v50 = vpop.f32.mrf.mxu0  ;;  %v1495_v51 = vpop.f32.mrf.mxu1 }
 0x38d   : > { %v1500_v54 = vrot.slane %v1453_v50, 7  ;;  %v1504_v55 = vrot.slane %v1495_v51, 1 }
 0x38e   : > { %v1455_v56 = vpop.f32.mrf.mxu0  ;;  %v1863_v57 = vpop.f32.mrf.mxu1 }
 0x38f   : > { %v1502_v58 = vsel %vm676_vm5, %v1500_v54, %v1499_v52  ;;  %v1506_v59 = vsel %vm681_vm6, %v1504_v55, %v1503_v53  ;;  %v1501_v60 = vsel %vm676_vm5, %v1499_v52, %v1500_v54  ;;  %v1505_v3 = vsel %vm681_vm6, %v1503_v53, %v1504_v55 }
 0x390   : > { %v1507_v61 = vmul.f32 %v2324_v0, %v1502_v58  ;;  %v1510_v62 = vadd.f32 %v1501_v60, %v1455_v56  ;;  %v1512_v63 = vmul.f32 %v2329_v6, %v1506_v59 }
 0x392   : > { %v1509_v2 = vadd.f32 %v1507_v61, %v1451_v48  ;;  %v1514_v7 = vadd.f32 %v1512_v63, %v1510_v62 }
 0x394   : > { %v1513_v8 = vadd.f32 %v1509_v2, %v1505_v3  ;;  %v1524_v0 = vadd.f32 %v1734_v1, %v1514_v7 }
 0x396   : > { %v1523_v9 = vadd.f32 %v1734_v1, %v1513_v8  ;;  %v1526_v10 = vmax.f32 %v1524_v0, 0.0 }
 0x398   : > { %v1525_v6 = vmax.f32 %v1523_v9, 0.0  ;;  %1528 = vst [vmem:[%s2292_s8 + $0x28] sm:$0xff] %v1526_v10 }
 0x39a   : > { %1527 = vst [vmem:[%s2292_s8 + $0x10] sm:$0xff] %v1525_v6 }
 0x39b   : > { %2093 = shalt.err (!%p2090_p0)
}
 0x39c   : > { %s2094_s6 = scalar_lea.hbm %s2402_s30, 768  ;;  %s2098_s13 = scalar_lea.hbm %s2453_s5, 1536 }
 0x39d   : > { %p2095_p1 = scmp.ne.s32.totalorder %s2402_s30, %s2094_s6  ;;  %p2099_p4 = scmp.lt.s32.totalorder %s2402_s30, %s2453_s5 }
 0x39e   : > { %p2100_p7 = scmp.lt.s32.totalorder %s2098_s13, %s2094_s6 }
 0x39f   : > { %p2096_p2 = pnand %p2095_p1, %p2224_p5 }
 0x3a0   : > { %p2101_p6 = por %p2100_p7, %p2099_p4 }
 0x3a1   : > { %p2097_p3 = pneg %p2096_p2 }
 0x3a3   : > { %p2102_p8 = pnand %p2101_p6, %p2097_p3 }
 0x3a5   : > { %2105 = shalt.err (!%p2102_p8)
}
 0x3a6   : > { %s2154_s16 = smov 384   ;;  %s2155_s17 = smov 24  }
 0x3a7   : > { %1870 = dma.vmem_to_hbm [thread:$0]  (%p2224_p5), %s2397_s23, 768, %s2402_s30, %s2408_s22, %s2154_s16, %s2154_s16, %s2155_s17  }
 0x3a8 PF: > { %p1882_p9 = scmp.ge.s32.totalorder %s2144_s21, 2  ;;  %s1559_s25 = sand.u32 1, %s2132_s18  }
 0x3a9   : > { %p2457_p10 = scmp.ne.s32.totalorder %s2455_s29, 0  ;;  %s1560_s26 = scalar_lea.sflag [#allocation4], %s1559_s25 }
 0x3ab   : > { %p1877_p11 = pnand %p1882_p9, %p2457_p10 }
 0x3ad   : > { %p1878_p12 = pneg %p1877_p11 }
 0x3af   : > { %2127 = dma.done.wait (%p1878_p12), %s1560_s26, 768  }
 0x3b0   : > { %2129 = vsyncadd (%p1878_p12), %s1560_s26, 4294966528  ;;  %p16_p13 = scmp.ge.s32.totalorder %s2211_s24, 4   ;;  %s2458_s18 = smov %s2136_s19 }
 0x3b1   : > { %s2459_s19 = smov %s2140_s20  ;;  %s2460_s20 = smov %s2222_s27 }
 0x3b2   : > { %s2461_s21 = smov %s2211_s24  ;;  %18 = sbr.rel (!%p16_p13) target bundleno = 4 (0x4), region = 86 }
 0x3b7   :  { %1565 = vsyncpa [#allocation3], 1 }
 0x3b8   :  { %1567 = vsyncpa [#allocation3 + $0x1], 1 }
 0x3b9   :  { %1568 = vsyncpa [#allocation4], 1 }
 0x3ba   :  { %1570 = vsyncpa [#allocation4 + $0x1], 1 }

</bundles_post_ra>
